<compile_context>
chip_gen: v6e
topology: v6e:2x2x1
jax: 0.10.0
libtpu: 0.0.40
codegen_flags: <defaults>
</compile_context>

<pallas_src>
import jax
import jax.numpy as jnp
from jax.experimental import pallas as pl
from jax.experimental.pallas import tpu as pltpu

VOCAB = 10   # matches torch.nn.Embedding(10, 3)
DIM = 3
BATCH, SEQ = 2, 8   # small example token-id input shape


def embedding_kernel(ids_ref, table_ref, out_ref):
    # ids_ref:   (N, 1)  int32   (VMEM, whole array)
    # table_ref: (V, D)  float32 (VMEM, whole array — 10x3 is tiny)
    # out_ref:   (N, D)  float32 (VMEM, whole array)
    n = ids_ref.shape[0]
    v = table_ref.shape[0]

    ids = ids_ref[...]                                            # (N, 1)
    vocab_ids = jax.lax.broadcasted_iota(jnp.int32, (n, v), 1)    # (N, V)
    one_hot = (ids == vocab_ids).astype(table_ref.dtype)          # (N, V)

    # Gather via one-hot matmul: out[n, d] = sum_v one_hot[n, v] * table[v, d]
    out_ref[...] = jnp.dot(
        one_hot, table_ref[...], preferred_element_type=jnp.float32
    ).astype(out_ref.dtype)


def embedding(ids, table):
    """Embedding forward: ids (any int shape), table (VOCAB, DIM) -> (*ids.shape, DIM)."""
    orig_shape = ids.shape
    n = ids.size
    ids2d = ids.reshape(n, 1).astype(jnp.int32)

    out = pl.pallas_call(
        embedding_kernel,
        out_shape=jax.ShapeDtypeStruct((n, table.shape[1]), table.dtype),
        # No grid, no index_map: single invocation, whole arrays resident in VMEM.
        in_specs=[
            pl.BlockSpec(memory_space=pltpu.MemorySpace.VMEM),   # ids
            pl.BlockSpec(memory_space=pltpu.MemorySpace.VMEM),   # table
        ],
        out_specs=pl.BlockSpec(memory_space=pltpu.MemorySpace.VMEM),
    )(ids2d, table)

    return out.reshape(*orig_shape, table.shape[1])


if __name__ == "__main__":
    key = jax.random.PRNGKey(0)
    k_tab, k_ids = jax.random.split(key)

    # Embedding weight, same init spirit as torch (randn), deterministic.
    table = jax.random.normal(k_tab, (VOCAB, DIM), dtype=jnp.float32)
    # Token ids in [0, VOCAB), shape (batch=2, seq=8) — matches module forward x.
    ids = jax.random.randint(k_ids, (BATCH, SEQ), 0, VOCAB, dtype=jnp.int32)

    out = embedding(ids, table)
    out = jax.block_until_ready(out)

    # Reference: plain gather, identical to torch.nn.Embedding forward.
    ref = jnp.take(table, ids, axis=0)
    assert out.shape == (BATCH, SEQ, DIM), out.shape
    assert jnp.allclose(out, ref), "mismatch vs reference embedding gather"

    print("KERNEL_OK")
</pallas_src>

<mosaic_0001>
module attributes {stable_mosaic.version = 11 : i64} {
  func.func @embedding_kernel(%arg0: memref<16x1xi32, #tpu.memory_space<vmem>>, %arg1: memref<10x3xf32, #tpu.memory_space<vmem>>, %arg2: memref<16x3xf32, #tpu.memory_space<vmem>>) attributes {dimension_semantics = [], scalar_prefetch = 0 : i64, scratch_operands = 0 : i64, tpu.core_type = #tpu.core_type<tc>} {
    %c0 = arith.constant 0 : index
    %c0_0 = arith.constant 0 : index
    %0 = vector.load %arg0[%c0, %c0_0] : memref<16x1xi32, #tpu.memory_space<vmem>>, vector<16x1xi32>
    %1 = tpu.iota {dimensions = array<i32: 1>} : vector<16x10xi32>
    %2 = vector.broadcast %0 : vector<16x1xi32> to vector<16x10xi32>
    %3 = arith.cmpi eq, %2, %1 : vector<16x10xi32>
    %4 = arith.extui %3 : vector<16x10xi1> to vector<16x10xi32>
    %5 = arith.sitofp %4 : vector<16x10xi32> to vector<16x10xf32>
    %c0_1 = arith.constant 0 : index
    %c0_2 = arith.constant 0 : index
    %6 = vector.load %arg1[%c0_1, %c0_2] : memref<10x3xf32, #tpu.memory_space<vmem>>, vector<10x3xf32>
    %cst = arith.constant dense<0.000000e+00> : vector<16x3xf32>
    %7 = tpu.matmul %5, %6, %cst {dimension_numbers = #tpu.dot_dimension_numbers<[1], [0], [0], [1], [0, 0, 1, 1], [], []>} : vector<16x10xf32>, vector<10x3xf32>, vector<16x3xf32> -> vector<16x3xf32>
    %c0_3 = arith.constant 0 : index
    %c0_4 = arith.constant 0 : index
    %8 = vector.load %arg2[%c0_3, %c0_4] : memref<16x3xf32, #tpu.memory_space<vmem>>, vector<16x3xf32>
    tpu.vector_store %arg2[%c0_3, %c0_4], %7 {strides = array<i32>} : memref<16x3xf32, #tpu.memory_space<vmem>>, vector<16x3xf32>,
    return
  }
}

</mosaic_0001>

<bundles_post_ra>
// kernel: tpu_custom_call.1
= control target key start
LH: loop header
LB: loop body
LE: loop exit
PB: predicated region body
PF: predicated region fallthrough
CT: control target
= control target key end

     0   :  { %vm36_vm0 = vcmask 1041408   ;;  %v141_v0 = vmov 0   ;;  %v13_v5 = vlaneseq  ;;  %vm29_vm1 = vcmask 80896   ;;  %s176_s0 = inlined_call_operand.vmem [shape: s32[16,1], index: 0, kind: input, shape index: {}]   ;;  %s177_s1 = inlined_call_operand.vmem [shape: f32[10,3], index: 1, kind: input, shape index: {}]   ;;  %s178_s2 = inlined_call_operand.vmem [shape: f32[16,3], index: 2, kind: output, shape index: {}]  }
   0x1   :  { %140 = vset.pattern.permute.xlu0 %v141_v0  ;;  %v11_v1 = vld [vmem:[%s176_s0] sm:$0xff]  ;;  %v28_v2 = vld [vmem:[%s177_s1 + $0x8] sm:$0x3]  ;;  %v142_v8 = vmov 0.0   ;;  %vm115_vm4 = vcmask 23552  }
   0x2   :  { %16 = vperm.xlu0 %140, %v11_v1   ;;  %131 = vmatprep.subr.msk.mxu0 %vm36_vm0, %v28_v2  ;;  %v27_v3 = vld [vmem:[%s177_s1] sm:$0xff]  ;;  %v12_v4 = vld [vmem:[%s176_s0 + $0x8] sm:$0xff]  ;;  %v14_v6 = vand.u32 127, %v13_v5 }
   0x3   :  { %132 = vmatpush3.msk.msra.mxu0 %vm36_vm0, %v28_v2 }
   0x4   :  { %133 = vmatprep.subr.mxu0 %v27_v3 }
   0x5   :  { %134 = vmatpush3.msra.mxu0 %v27_v3 }
   0x6   :  { %19 = vperm.xlu0 %140, %v12_v4  }
  0x7d   :  { %v17_v7 = vpop.permute.xlu0 %16 }
  0x7e   :  { %vm21_vm2 = vcmp.eq.s32.totalorder %v17_v7, %v14_v6 }
  0x7f   :  { %v122_v9 = vsel %vm21_vm2, 1.0, %v142_v8 }
  0x80   :  { %135 = vmatprep.mubr.msk.f32.mxu0 %vm29_vm1, %v122_v9 }
  0x81   :  { %v20_v10 = vpop.permute.xlu0 %19 }
  0x82   :  { %vm22_vm3 = vcmp.eq.s32.totalorder %v20_v10, %v14_v6 }
  0x83   :  { %v123_v11 = vsel %vm22_vm3, 1.0, %v142_v8 }
  0x84   :  { %136 = vmatmul.mubr.msk.f32.vlgmr.msra.gmra.mxu0 %vm29_vm1, %v123_v11 }
 0x144   :  { %v137_v12 = vpop.f32.mrf.mxu0 }
 0x145   :  { %117 = vst.msk [vmem:[%s178_s2 + $0x8] sm:$0xff] %vm115_vm4, %v137_v12 }
 0x146   :  { %v106_v13 = vpop.f32.mrf.mxu0 }
 0x147   :  { %116 = vst.msk [vmem:[%s178_s2] sm:$0xff] %vm115_vm4, %v106_v13 }

</bundles_post_ra>
